<compile_context>
chip_gen: v6e
topology: v6e:2x2x1
jax: 0.10.0
libtpu: 0.0.40
codegen_flags: <defaults>
</compile_context>

<pallas_src>
import functools

import numpy as np

import jax
import jax.numpy as jnp
from jax.experimental import pallas as pl
from jax.experimental.pallas import tpu as pltpu


# ----------------------------------------------------------------------------
# Pallas kernel (fully fused forward pass, single grid step)
# ----------------------------------------------------------------------------

def _fused_relation_kernel(x_ref, w_ref, o_ref, *, layout):
    """x_ref: (B, Cin*L) activations (NCL-flatten order).
    w_ref: (R, P) packed weight slab (BN folded, banded conv weights, FC head).
    o_ref: (B, 1) sigmoid output.
    layout: static python tuple of row offsets/extents into the slab.
    """
    conv_ws, conv_bs, (fo1, fr1), (fbo1,), (fo2,), (fbo2,) = layout

    h = x_ref[...].astype(jnp.float32)

    # Conv1d(padding=1) + BN + ReLU stack, each layer = one lane-dense matmul
    # against the pre-built banded weight (zero padding absorbed in the band).
    for (wo, wr), (bo,) in zip(conv_ws, conv_bs):
        W = w_ref[wo:wo + wr, :]            # static slice: free VMEM view
        b = w_ref[bo:bo + 1, :]
        h = jnp.dot(h, W, preferred_element_type=jnp.float32)
        h = jnp.maximum(h + b, 0.0)

    # TODO(synk): nn.Dropout is identity in eval mode; training-mode dropout
    # is not implemented here.

    # fc1 + ReLU (activation already equals out.view(160, -1) flatten order;
    # weight is zero-padded to full lane width so the output stays 128-dense).
    W1 = w_ref[fo1:fo1 + fr1, :]
    b1 = w_ref[fbo1:fbo1 + 1, :]
    h = jnp.maximum(jnp.dot(h, W1, preferred_element_type=jnp.float32) + b1, 0.0)

    # fc2 (N=1) on VPU + lane reduction instead of a last MXU round trip.
    w2 = w_ref[fo2:fo2 + 1, :]              # (1, P) row, zeros beyond H
    b2 = w_ref[fbo2:fbo2 + 1, 0:1]          # (1, 1) scalar bias
    y = jnp.sum(h * w2, axis=-1, keepdims=True) + b2
    o_ref[...] = (1.0 / (1.0 + jnp.exp(-y))).astype(o_ref.dtype)


# ----------------------------------------------------------------------------
# Host-side (numpy) weight transforms: done ONCE, outside the per-call path
# ----------------------------------------------------------------------------

def fold_bn(w, b_conv, gamma, beta, mean, var, eps=1e-5):
    """Fold eval-mode BatchNorm1d into conv weight (K, Cin, Cout) and bias."""
    scale = gamma / jnp.sqrt(var + eps)            # (Cout,)
    w_eff = w * scale[None, None, :]
    b_eff = (b_conv - mean) * scale + beta
    return w_eff, b_eff


def _round_up(x, m):
    return ((x + m - 1) // m) * m


def _build_banded_conv_weight_np(w_eff, length, kernel_size, padding=1):
    """Expand a Conv1d weight (K, Cin, Cout) into a banded matrix acting on
    NCL-flat inputs:  out_flat = x_flat @ W_band,  W_band: (Cin*L, Cout*L).
    Zero padding of the conv is absorbed into the band (missing entries)."""
    w = np.asarray(w_eff, np.float32)
    K, Cin, Cout = w.shape
    L = length
    band = np.zeros((Cin, L, Cout, L), np.float32)   # (Cin, L_in, Cout, L_out)
    for l_out in range(L):
        for k in range(K):
            l_in = l_out + k - padding
            if 0 <= l_in < L:
                band[:, l_in, :, l_out] = w[k]
    return band.reshape(Cin * L, Cout * L)


def pack_relation_params(params, *, input_length, kernel_size):
    """Build the single packed, 128-lane-aligned weight slab (numpy, host-side)
    and the static layout describing where each piece lives.  Call ONCE."""
    L = input_length
    conv_layers = params["conv_layers"]
    H = int(params["w_fc1"].shape[1])

    widths = [int(w_eff.shape[2]) * L for (w_eff, _) in conv_layers]
    P = _round_up(max(widths + [H]), 128)            # lane width of the slab

    pieces = []       # (row_offset, np_array)
    offset = 0

    def pad_cols(a):
        out = np.zeros((a.shape[0], P), np.float32)
        out[:, :a.shape[1]] = a
        return out

    def add(arr):
        nonlocal offset
        off = offset
        pieces.append((off, arr))
        offset = _round_up(off + arr.shape[0], 8)    # keep every piece 8-aligned
        return off, arr.shape[0]

    layout_conv_w, layout_conv_b = [], []
    for li, (w_eff, b_eff) in enumerate(conv_layers):
        Wb = _build_banded_conv_weight_np(w_eff, L, kernel_size)  # (Cin_i*L, Cout_i*L)
        if li > 0:
            # Activations after layer 0 are carried at full lane width P with
            # zero padding; pad the band with matching zero rows.
            Wb_pad = np.zeros((P, Wb.shape[1]), np.float32)
            Wb_pad[:Wb.shape[0], :] = Wb
            Wb = Wb_pad
        Wb = pad_cols(Wb)
        bb = pad_cols(np.repeat(np.asarray(b_eff, np.float32), L)[None, :])
        layout_conv_w.append(add(Wb))
        layout_conv_b.append((add(bb)[0],))

    # fc1: pad to (P, P) so its output stays lane-dense (extra cols are zero).
    wf1 = np.asarray(params["w_fc1"], np.float32)
    wf1_pad = np.zeros((P, P), np.float32)
    wf1_pad[:wf1.shape[0], :wf1.shape[1]] = wf1
    fc1_w = add(wf1_pad)
    fc1_b = (add(pad_cols(np.asarray(params["b_fc1"], np.float32)[None, :]))[0],)

    # fc2 as a (1, H) row (consumed by VPU mul + lane reduce) + scalar bias.
    fc2_w = (add(pad_cols(np.asarray(params["w_fc2"], np.float32).reshape(1, H)))[0],)
    fc2_b = (add(pad_cols(np.asarray(params["b_fc2"], np.float32).reshape(1, 1)))[0],)

    total_rows = _round_up(offset, 8)
    slab = np.zeros((total_rows, P), np.float32)
    for off, arr in pieces:
        slab[off:off + arr.shape[0], :] = arr

    layout = (tuple(layout_conv_w), tuple(layout_conv_b),
              fc1_w, fc1_b, fc2_w, fc2_b)
    return jnp.asarray(slab), layout


# ----------------------------------------------------------------------------
# Forward wrapper: per call, only the single pallas_call runs
# ----------------------------------------------------------------------------

def relation_function_forward(x_ncl, slab, *, layout):
    """x_ncl: (B, C, L) float32 (PyTorch NCL).  Returns (B, 1) sigmoid output."""
    B, Cin, L = x_ncl.shape
    x_flat = x_ncl.reshape(B, Cin * L)               # contiguous -> free reshape

    kern = functools.partial(_fused_relation_kernel, layout=layout)
    return pl.pallas_call(
        kern,
        out_shape=jax.ShapeDtypeStruct((B, 1), x_ncl.dtype),
        grid=(1,),                                   # single step: no pipeline
        in_specs=[
            pl.BlockSpec((B, Cin * L), lambda i: (0, 0)),
            pl.BlockSpec(slab.shape, lambda i: (0, 0)),
        ],
        out_specs=pl.BlockSpec((B, 1), lambda i: (0, 0)),
        compiler_params=pltpu.CompilerParams(
            dimension_semantics=("arbitrary",)),
    )(x_flat, slab)


# ----------------------------------------------------------------------------
# Pure-JAX reference (same math, direct conv) for in-script validation
# ----------------------------------------------------------------------------

def reference_forward(x_ncl, params, *, kernel_size):
    out = x_ncl                                      # (B, C, L)
    for (w_eff, b_eff) in params["conv_layers"]:
        B, Cin, L = out.shape
        xp = jnp.pad(out, ((0, 0), (0, 0), (1, 1)))
        acc = jnp.zeros((B, w_eff.shape[2], L), jnp.float32)
        for k in range(kernel_size):
            acc = acc + jnp.einsum("bcl,cd->bdl", xp[:, :, k:k + L], w_eff[k])
        out = jnp.maximum(acc + b_eff[None, :, None], 0.0)
    flat = out.reshape(out.shape[0], -1)             # out.view(160, -1) on NCL
    h = jnp.maximum(flat @ params["w_fc1"] + params["b_fc1"], 0.0)
    y = h @ params["w_fc2"] + params["b_fc2"]
    return 1.0 / (1.0 + jnp.exp(-y))


# ----------------------------------------------------------------------------
# Deterministic parameter construction (synthetic, mirrors __init__ shapes)
# ----------------------------------------------------------------------------

def make_params(key, *, num_relation_layers, embedding_output_filter,
                input_length, filters, kernel_size, num_fc_units):
    keys = iter(jax.random.split(key, 64))
    conv_layers = []
    c_in = embedding_output_filter
    for li in range(num_relation_layers):
        c_out = filters[li]
        w = jax.random.normal(next(keys), (kernel_size, c_in, c_out),
                              jnp.float32) * 0.1
        b_conv = jax.random.normal(next(keys), (c_out,), jnp.float32) * 0.1
        gamma = 1.0 + 0.1 * jax.random.normal(next(keys), (c_out,), jnp.float32)
        beta = 0.1 * jax.random.normal(next(keys), (c_out,), jnp.float32)
        mean = 0.1 * jax.random.normal(next(keys), (c_out,), jnp.float32)
        var = 1.0 + 0.1 * jnp.abs(jax.random.normal(next(keys), (c_out,),
                                                    jnp.float32))
        conv_layers.append(fold_bn(w, b_conv, gamma, beta, mean, var))
        c_in = c_out

    conv_output_size = c_in * input_length
    w_fc1 = jax.random.normal(next(keys), (conv_output_size, num_fc_units),
                              jnp.float32) * 0.1
    b_fc1 = jax.random.normal(next(keys), (num_fc_units,), jnp.float32) * 0.1
    w_fc2 = jax.random.normal(next(keys), (num_fc_units, 1), jnp.float32) * 0.1
    b_fc2 = jax.random.normal(next(keys), (1,), jnp.float32) * 0.1
    return {
        "conv_layers": conv_layers,
        "w_fc1": w_fc1, "b_fc1": b_fc1,
        "w_fc2": w_fc2, "b_fc2": b_fc2,
    }


if __name__ == "__main__":
    # Module hyperparameters (small, consistent with the forward pass).
    NUM_RELATION_LAYERS = 2
    EMB_FILTERS = 4          # embedding_output_filter (input channels)
    INPUT_LENGTH = 16
    FILTERS = (8, 8, 8, 8)   # num_rela_filters_1..4
    KERNEL_SIZE = 3          # padding=1 + k=3 keeps out_length == input_length
    NUM_FC_UNITS = 32
    BATCH = 160              # hard-coded by `out.view(160, -1)` in forward

    key = jax.random.PRNGKey(0)
    k_x, k_p = jax.random.split(key)
    x = jax.random.normal(k_x, (BATCH, EMB_FILTERS, INPUT_LENGTH), jnp.float32)

    params = make_params(
        k_p,
        num_relation_layers=NUM_RELATION_LAYERS,
        embedding_output_filter=EMB_FILTERS,
        input_length=INPUT_LENGTH,
        filters=FILTERS,
        kernel_size=KERNEL_SIZE,
        num_fc_units=NUM_FC_UNITS,
    )

    # One-time host-side packing (hoisted out of the per-call path).
    slab, layout = pack_relation_params(
        params, input_length=INPUT_LENGTH, kernel_size=KERNEL_SIZE)

    fwd = jax.jit(functools.partial(relation_function_forward, layout=layout))

    out = jax.block_until_ready(fwd(x, slab))
    assert out.shape == (160, 1)
    assert bool(jnp.all((out >= 0.0) & (out <= 1.0)))

    ref = jax.block_until_ready(reference_forward(x, params,
                                                  kernel_size=KERNEL_SIZE))
    max_err = float(jnp.max(jnp.abs(out - ref)))
    assert max_err < 1e-4, f"mismatch vs reference: {max_err}"

    print("KERNEL_OK")
</pallas_src>

<mosaic_0001>
module attributes {stable_mosaic.version = 11 : i64} {
  func.func @_fused_relation_kernel(%arg0: i32, %arg1: memref<160x64xf32, #tpu.memory_space<vmem>>, %arg2: memref<360x128xf32, #tpu.memory_space<vmem>>, %arg3: memref<160x1xf32, #tpu.memory_space<vmem>>) attributes {dimension_semantics = [#tpu.dimension_semantics<arbitrary>], iteration_bounds = array<i64: 1>, scalar_prefetch = 0 : i64, scratch_operands = 0 : i64, tpu.core_type = #tpu.core_type<tc>, window_params = [{pipeline_mode = #tpu.pipeline_mode<synchronous>, transform_indices = @transform_0, window_bounds = array<i64: 160, 64>}, {pipeline_mode = #tpu.pipeline_mode<synchronous>, transform_indices = @transform_1, window_bounds = array<i64: 360, 128>}, {pipeline_mode = #tpu.pipeline_mode<synchronous>, transform_indices = @transform_2, window_bounds = array<i64: 160, 1>}]} {
    %c0 = arith.constant 0 : index
    %c0_0 = arith.constant 0 : index
    %0 = vector.load %arg1[%c0, %c0_0] : memref<160x64xf32, #tpu.memory_space<vmem>>, vector<160x64xf32>
    %c0_1 = arith.constant 0 : index
    %c0_2 = arith.constant 0 : index
    %1 = vector.load %arg2[%c0_1, %c0_2] : memref<360x128xf32, #tpu.memory_space<vmem>>, vector<64x128xf32>
    %c64 = arith.constant 64 : index
    %c0_3 = arith.constant 0 : index
    %2 = vector.load %arg2[%c64, %c0_3] : memref<360x128xf32, #tpu.memory_space<vmem>>, vector<1x128xf32>
    %cst = arith.constant dense<0.000000e+00> : vector<160x128xf32>
    %3 = tpu.matmul %0, %1, %cst {dimension_numbers = #tpu.dot_dimension_numbers<[1], [0], [0], [1], [0, 0, 1, 1], [], []>} : vector<160x64xf32>, vector<64x128xf32>, vector<160x128xf32> -> vector<160x128xf32>
    %4 = vector.broadcast %2 : vector<1x128xf32> to vector<160x128xf32>
    %5 = arith.addf %3, %4 : vector<160x128xf32>
    %cst_4 = arith.constant 0.000000e+00 : f32
    %6 = vector.broadcast %cst_4 : f32 to vector<160x128xf32>
    %7 = arith.maximumf %5, %6 : vector<160x128xf32>
    %c72 = arith.constant 72 : index
    %c0_5 = arith.constant 0 : index
    %8 = vector.load %arg2[%c72, %c0_5] : memref<360x128xf32, #tpu.memory_space<vmem>>, vector<128x128xf32>
    %c200 = arith.constant 200 : index
    %c0_6 = arith.constant 0 : index
    %9 = vector.load %arg2[%c200, %c0_6] : memref<360x128xf32, #tpu.memory_space<vmem>>, vector<1x128xf32>
    %cst_7 = arith.constant dense<0.000000e+00> : vector<160x128xf32>
    %10 = tpu.matmul %7, %8, %cst_7 {dimension_numbers = #tpu.dot_dimension_numbers<[1], [0], [0], [1], [0, 0, 1, 1], [], []>} : vector<160x128xf32>, vector<128x128xf32>, vector<160x128xf32> -> vector<160x128xf32>
    %11 = vector.broadcast %9 : vector<1x128xf32> to vector<160x128xf32>
    %12 = arith.addf %10, %11 : vector<160x128xf32>
    %cst_8 = arith.constant 0.000000e+00 : f32
    %13 = vector.broadcast %cst_8 : f32 to vector<160x128xf32>
    %14 = arith.maximumf %12, %13 : vector<160x128xf32>
    %c208 = arith.constant 208 : index
    %c0_9 = arith.constant 0 : index
    %15 = vector.load %arg2[%c208, %c0_9] : memref<360x128xf32, #tpu.memory_space<vmem>>, vector<128x128xf32>
    %c336 = arith.constant 336 : index
    %c0_10 = arith.constant 0 : index
    %16 = vector.load %arg2[%c336, %c0_10] : memref<360x128xf32, #tpu.memory_space<vmem>>, vector<1x128xf32>
    %cst_11 = arith.constant dense<0.000000e+00> : vector<160x128xf32>
    %17 = tpu.matmul %14, %15, %cst_11 {dimension_numbers = #tpu.dot_dimension_numbers<[1], [0], [0], [1], [0, 0, 1, 1], [], []>} : vector<160x128xf32>, vector<128x128xf32>, vector<160x128xf32> -> vector<160x128xf32>
    %18 = vector.broadcast %16 : vector<1x128xf32> to vector<160x128xf32>
    %19 = arith.addf %17, %18 : vector<160x128xf32>
    %cst_12 = arith.constant 0.000000e+00 : f32
    %20 = vector.broadcast %cst_12 : f32 to vector<160x128xf32>
    %21 = arith.maximumf %19, %20 : vector<160x128xf32>
    %c344 = arith.constant 344 : index
    %c0_13 = arith.constant 0 : index
    %22 = vector.load %arg2[%c344, %c0_13] : memref<360x128xf32, #tpu.memory_space<vmem>>, vector<1x128xf32>
    %c352 = arith.constant 352 : index
    %c0_14 = arith.constant 0 : index
    %23 = vector.load %arg2[%c352, %c0_14] : memref<360x128xf32, #tpu.memory_space<vmem>>, vector<1x1xf32>
    %24 = vector.broadcast %22 : vector<1x128xf32> to vector<160x128xf32>
    %25 = arith.mulf %21, %24 : vector<160x128xf32>
    %cst_15 = arith.constant dense<0.000000e+00> : vector<160xf32>
    %26 = vector.multi_reduction <add>, %25, %cst_15 [1] : vector<160x128xf32> to vector<160xf32>
    %27 = vector.shape_cast %26 : vector<160xf32> to vector<160x1xf32>
    %28 = vector.broadcast %23 : vector<1x1xf32> to vector<160x1xf32>
    %29 = arith.addf %27, %28 : vector<160x1xf32>
    %cst_16 = arith.constant 0.000000e+00 : f32
    %30 = vector.broadcast %cst_16 : f32 to vector<160x1xf32>
    %31 = arith.subf %30, %29 : vector<160x1xf32>
    %32 = math.exp %31 : vector<160x1xf32>
    %cst_17 = arith.constant 1.000000e+00 : f32
    %33 = vector.broadcast %cst_17 : f32 to vector<160x1xf32>
    %34 = arith.addf %33, %32 : vector<160x1xf32>
    %cst_18 = arith.constant 1.000000e+00 : f32
    %35 = vector.broadcast %cst_18 : f32 to vector<160x1xf32>
    %36 = arith.divf %35, %34 : vector<160x1xf32>
    %c0_19 = arith.constant 0 : index
    %c0_20 = arith.constant 0 : index
    %37 = vector.load %arg3[%c0_19, %c0_20] : memref<160x1xf32, #tpu.memory_space<vmem>>, vector<160x1xf32>
    tpu.vector_store %arg3[%c0_19, %c0_20], %36 {strides = array<i32>} : memref<160x1xf32, #tpu.memory_space<vmem>>, vector<160x1xf32>,
    return
  }
  func.func @transform_0(%arg0: i32) -> (i32, i32) {
    %c0_i32 = arith.constant 0 : i32
    %c0_i32_0 = arith.constant 0 : i32
    %c0_i32_1 = arith.constant 0 : i32
    return %c0_i32, %c0_i32_0 : i32, i32
  }
  func.func @transform_1(%arg0: i32) -> (i32, i32) {
    %c0_i32 = arith.constant 0 : i32
    %c0_i32_0 = arith.constant 0 : i32
    %c0_i32_1 = arith.constant 0 : i32
    return %c0_i32, %c0_i32_0 : i32, i32
  }
  func.func @transform_2(%arg0: i32) -> (i32, i32) {
    %c0_i32 = arith.constant 0 : i32
    %c0_i32_0 = arith.constant 0 : i32
    %c0_i32_1 = arith.constant 0 : i32
    return %c0_i32, %c0_i32_0 : i32, i32
  }
}

</mosaic_0001>

<bundles_post_ra>
// kernel: relation_function_forward.1
= control target key start
LH: loop header
LB: loop body
LE: loop exit
PB: predicated region body
PF: predicated region fallthrough
CT: control target
= control target key end

     0   :  { %7 = vsyncpa [#allocation3], 0  ;;  %s1384_s9 = smov [#allocation2]   ;;  %s1741_s0 = inlined_call_operand.vmem [shape: f32[160,64], index: 0, kind: input, shape index: {}]   ;;  %s1742_s1 = inlined_call_operand.hbm [shape: f32[360,128], index: 1, kind: input, shape index: {}]   ;;  %s1743_s2 = inlined_call_operand.vmem [shape: f32[160,1], index: 2, kind: output, shape index: {}]  }
   0x1   :  { %s15_s10 = sshll.u32 %s1384_s9, 4  ;;  %s16_s10 = int_to_ptr.vmem [resolvable:$true] %s15_s10 }
   0x2   :  { %s1370_s11 = scalar_lea.vmem %s16_s10, 5760  ;;  %p1375_p1 = scmp.lt.s32.totalorder %s16_s10, %s16_s10 }
   0x3   :  { %p1371_p0 = scmp.ne.s32.totalorder %s16_s10, %s1370_s11  ;;  %p1376_p2 = scmp.lt.s32.totalorder %s1370_s11, %s1370_s11 }
   0x5   :  { %p1377_p3 = por %p1376_p2, %p1375_p1 }
   0x7   :  { %p1378_p4 = pnand %p1377_p3, %p1371_p0 }
   0x9   :  { %1381 = shalt.err (!%p1378_p4)
}
   0xa   :  { %s1385_s12 = smov 128   ;;  %s1386_s13 = smov 8  }
   0xb   :  { %21 = dma.hbm_to_vmem [thread:$0]  %s1742_s1, 5760, %s16_s10, [#allocation3], %s1385_s12, %s1385_s12, %s1386_s13  }
   0xc   :  { %1382 = dma.done.wait [#allocation3], 5760  }
   0xd   :  { %1383 = vsyncadd [#allocation3], 4294961536  ;;  %v52_v0 = vld [vmem:[#allocation2 + $0x38] sm:$0xff]  ;;  %v51_v1 = vld [vmem:[#allocation2 + $0x30] sm:$0xff]  ;;  %vm58_vm0 = vcmask 523264   ;;  %vm926_vm1 = vcmask 7168  }
   0xe   :  { %1077 = vmatprep.subr.mxu0 %v52_v0  ;;  %v50_v2 = vld [vmem:[#allocation2 + $0x28] sm:$0xff]  ;;  %v25_v3 = vld [vmem:[%s1741_s0] sm:$0xff]  ;;  %v48_v5 = vld [vmem:[#allocation2 + $0x18] sm:$0xff] }
   0xf   :  { %1078 = vmatpush3.msra.mxu0 %v52_v0  ;;  %1093 = vmatprep.mubr.msk.f32.mxu0 %vm58_vm0, %v25_v3  ;;  %v49_v4 = vld [vmem:[#allocation2 + $0x20] sm:$0xff]  ;;  %v47_v6 = vld [vmem:[#allocation2 + $0x10] sm:$0xff]  ;;  %v318_v8 = vld [vmem:[#allocation2 + $0xb8] sm:$0xff] }
  0x10   :  { %1079 = vmatprep.subr.mxu0 %v51_v1  ;;  %v319_v7 = vld [vmem:[#allocation2 + $0xc0] sm:$0xff]  ;;  %v46_v9 = vld [vmem:[#allocation2 + $0x8] sm:$0xff]  ;;  %v317_v10 = vld [vmem:[#allocation2 + $0xb0] sm:$0xff] }
  0x11   :  { %1080 = vmatpush3.msra.mxu0 %v51_v1  ;;  %1123 = vmatprep.subr.mxu1 %v319_v7  ;;  %v45_v11 = vld [vmem:[#allocation2] sm:$0xff]  ;;  %v316_v12 = vld [vmem:[#allocation2 + $0xa8] sm:$0xff]  ;;  %v27_v14 = vld [vmem:[%s1741_s0 + $0x10] sm:$0xff] }
  0x12   :  { %1081 = vmatprep.subr.mxu0 %v50_v2  ;;  %1124 = vmatpush3.msra.mxu1 %v319_v7  ;;  %v26_v13 = vld [vmem:[%s1741_s0 + $0x8] sm:$0xff]  ;;  %v315_v15 = vld [vmem:[#allocation2 + $0xa0] sm:$0xff]  ;;  %v314_v16 = vld [vmem:[#allocation2 + $0x98] sm:$0xff] }
  0x13   :  { %1082 = vmatpush3.msra.mxu0 %v50_v2  ;;  %1125 = vmatprep.subr.mxu1 %v318_v8  ;;  %v28_v17 = vld [vmem:[%s1741_s0 + $0x18] sm:$0xff]  ;;  %v29_v18 = vld [vmem:[%s1741_s0 + $0x20] sm:$0xff]  ;;  %v313_v19 = vld [vmem:[#allocation2 + $0x90] sm:$0xff] }
  0x14   :  { %1083 = vmatprep.subr.mxu0 %v49_v4  ;;  %1126 = vmatpush3.msra.mxu1 %v318_v8  ;;  %v312_v20 = vld [vmem:[#allocation2 + $0x88] sm:$0xff]  ;;  %v31_v22 = vld [vmem:[%s1741_s0 + $0x30] sm:$0xff]  ;;  %v311_v23 = vld [vmem:[#allocation2 + $0x80] sm:$0xff] }
  0x15   :  { %1084 = vmatpush3.msra.mxu0 %v49_v4  ;;  %1127 = vmatprep.subr.mxu1 %v317_v10  ;;  %v30_v21 = vld [vmem:[%s1741_s0 + $0x28] sm:$0xff]  ;;  %v310_v24 = vld [vmem:[#allocation2 + $0x78] sm:$0xff]  ;;  %v33_v26 = vld [vmem:[%s1741_s0 + $0x40] sm:$0xff] }
  0x16   :  { %1085 = vmatprep.subr.mxu0 %v48_v5  ;;  %1128 = vmatpush3.msra.mxu1 %v317_v10  ;;  %v32_v25 = vld [vmem:[%s1741_s0 + $0x38] sm:$0xff]  ;;  %v309_v27 = vld [vmem:[#allocation2 + $0x70] sm:$0xff]  ;;  %v308_v28 = vld [vmem:[#allocation2 + $0x68] sm:$0xff] }
  0x17   :  { %1086 = vmatpush3.msra.mxu0 %v48_v5  ;;  %1129 = vmatprep.subr.mxu1 %v316_v12  ;;  %v34_v29 = vld [vmem:[%s1741_s0 + $0x48] sm:$0xff]  ;;  %v35_v30 = vld [vmem:[%s1741_s0 + $0x50] sm:$0xff]  ;;  %v36_v31 = vld [vmem:[%s1741_s0 + $0x58] sm:$0xff] }
  0x18   :  { %1087 = vmatprep.subr.mxu0 %v47_v6  ;;  %1130 = vmatpush3.msra.mxu1 %v316_v12  ;;  %v37_v32 = vld [vmem:[%s1741_s0 + $0x60] sm:$0xff]  ;;  %v38_v33 = vld [vmem:[%s1741_s0 + $0x68] sm:$0xff]  ;;  %v39_v34 = vld [vmem:[%s1741_s0 + $0x70] sm:$0xff] }
  0x19   :  { %1088 = vmatpush3.msra.mxu0 %v47_v6  ;;  %1131 = vmatprep.subr.mxu1 %v315_v15  ;;  %v40_v35 = vld [vmem:[%s1741_s0 + $0x78] sm:$0xff]  ;;  %v41_v36 = vld [vmem:[%s1741_s0 + $0x80] sm:$0xff]  ;;  %v42_v37 = vld [vmem:[%s1741_s0 + $0x88] sm:$0xff] }
  0x1a   :  { %1089 = vmatprep.subr.mxu0 %v46_v9  ;;  %1132 = vmatpush3.msra.mxu1 %v315_v15  ;;  %v43_v38 = vld [vmem:[%s1741_s0 + $0x90] sm:$0xff]  ;;  %v44_v39 = vld [vmem:[%s1741_s0 + $0x98] sm:$0xff]  ;;  %v307_v40 = vld [vmem:[#allocation2 + $0x60] sm:$0xff] }
  0x1b   :  { %1090 = vmatpush3.msra.mxu0 %v46_v9  ;;  %1133 = vmatprep.subr.mxu1 %v314_v16  ;;  %v306_v41 = vld [vmem:[#allocation2 + $0x58] sm:$0xff]  ;;  %v305_v42 = vld [vmem:[#allocation2 + $0x50] sm:$0xff]  ;;  %v304_v43 = vld [vmem:[#allocation2 + $0x48] sm:$0xff] }
  0x1c   :  { %1091 = vmatprep.subr.mxu0 %v45_v11  ;;  %1134 = vmatpush3.msra.mxu1 %v314_v16  ;;  %v525_v44 = vld [vmem:[#allocation2 + $0x148] sm:$0xff]  ;;  %v524_v45 = vld [vmem:[#allocation2 + $0x140] sm:$0xff]  ;;  %v1485_v46 = vld [vmem:[#allocation2 + $0x138] sm:$0xff] }
  0x1d   :  { %1092 = vmatpush3.msra.mxu0 %v45_v11  ;;  %1135 = vmatprep.subr.mxu1 %v313_v19  ;;  %v1487_v47 = vld [vmem:[#allocation2 + $0x130] sm:$0xff]  ;;  %v1491_v48 = vld [vmem:[#allocation2 + $0x128] sm:$0xff]  ;;  %v1495_v49 = vld [vmem:[#allocation2 + $0x120] sm:$0xff] }
  0x1e   :  { %1094 = vmatmul.mubr.msk.f32.vlgmr.msra.gmra.mxu0 %vm58_vm0, %v26_v13  ;;  %1136 = vmatpush3.msra.mxu1 %v313_v19  ;;  %v1499_v50 = vld [vmem:[#allocation2 + $0x118] sm:$0xff]  ;;  %v1503_v51 = vld [vmem:[#allocation2 + $0x110] sm:$0xff]  ;;  %v1507_v52 = vld [vmem:[#allocation2 + $0x108] sm:$0xff] }
  0x1f   :  { %1096 = vmatprep.mubr.msk.f32.mxu0 %vm58_vm0, %v27_v14  ;;  %1137 = vmatprep.subr.mxu1 %v312_v20  ;;  %v1511_v53 = vld [vmem:[#allocation2 + $0x100] sm:$0xff]  ;;  %v1515_v54 = vld [vmem:[#allocation2 + $0xf8] sm:$0xff]  ;;  %v1519_v55 = vld [vmem:[#allocation2 + $0xf0] sm:$0xff] }
  0x20   :  { %1138 = vmatpush3.msra.mxu1 %v312_v20  ;;  %1185 = vmatprep.subr.mxu0 %v525_v44  ;;  %v1523_v56 = vld [vmem:[#allocation2 + $0xe8] sm:$0xff]  ;;  %v1529_v57 = vld [vmem:[#allocation2 + $0x40] ss:$0 sm:$0xff] }
  0x21   :  { %1139 = vmatprep.subr.mxu1 %v311_v23  ;;  %1186 = vmatpush3.msra.mxu0 %v525_v44 }
  0x22   :  { %1097 = vmatmul.mubr.msk.f32.gmra.mxu0 %vm58_vm0, %v28_v17  ;;  %1140 = vmatpush3.msra.mxu1 %v311_v23 }
  0x23   :  { %1099 = vmatprep.mubr.msk.f32.mxu0 %vm58_vm0, %v29_v18  ;;  %1141 = vmatprep.subr.mxu1 %v310_v24 }
  0x24   :  { %1142 = vmatpush3.msra.mxu1 %v310_v24  ;;  %1187 = vmatprep.subr.mxu0 %v524_v45 }
  0x25   :  { %1143 = vmatprep.subr.mxu1 %v309_v27  ;;  %1188 = vmatpush3.msra.mxu0 %v524_v45 }
  0x26   :  { %1100 = vmatmul.mubr.msk.f32.gmra.mxu0 %vm58_vm0, %v30_v21  ;;  %1144 = vmatpush3.msra.mxu1 %v309_v27 }
  0x27   :  { %1102 = vmatprep.mubr.msk.f32.mxu0 %vm58_vm0, %v31_v22  ;;  %1145 = vmatprep.subr.mxu1 %v308_v28 }
  0x28   :  { %1146 = vmatpush3.msra.mxu1 %v308_v28  ;;  %1189 = vmatprep.subr.mxu0 %v1485_v46 }
  0x29   :  { %1147 = vmatprep.subr.mxu1 %v307_v40  ;;  %1190 = vmatpush3.msra.mxu0 %v1485_v46 }
  0x2a   :  { %1103 = vmatmul.mubr.msk.f32.gmra.mxu0 %vm58_vm0, %v32_v25  ;;  %1148 = vmatpush3.msra.mxu1 %v307_v40 }
  0x2b   :  { %1105 = vmatprep.mubr.msk.f32.mxu0 %vm58_vm0, %v33_v26  ;;  %1149 = vmatprep.subr.mxu1 %v306_v41 }
  0x2c   :  { %1150 = vmatpush3.msra.mxu1 %v306_v41  ;;  %1191 = vmatprep.subr.mxu0 %v1487_v47 }
  0x2d   :  { %1151 = vmatprep.subr.mxu1 %v305_v42  ;;  %1192 = vmatpush3.msra.mxu0 %v1487_v47 }
  0x2e   :  { %1106 = vmatmul.mubr.msk.f32.gmra.mxu0 %vm58_vm0, %v34_v29  ;;  %1152 = vmatpush3.msra.mxu1 %v305_v42 }
  0x2f   :  { %1108 = vmatprep.mubr.msk.f32.mxu0 %vm58_vm0, %v35_v30  ;;  %1153 = vmatprep.subr.mxu1 %v304_v43 }
  0x30   :  { %1154 = vmatpush3.msra.mxu1 %v304_v43  ;;  %1193 = vmatprep.subr.mxu0 %v1491_v48 }
  0x31   :  { %1247 = vmatprep.subr.mxu1 %v525_v44  ;;  %1194 = vmatpush3.msra.mxu0 %v1491_v48 }
  0x32   :  { %1109 = vmatmul.mubr.msk.f32.gmra.mxu0 %vm58_vm0, %v36_v31  ;;  %1195 = vmatprep.subr.mxu0 %v1495_v49 }
  0x33   :  { %1111 = vmatprep.mubr.msk.f32.mxu0 %vm58_vm0, %v37_v32  ;;  %1196 = vmatpush3.msra.mxu0 %v1495_v49 }
  0x34   :  { %1197 = vmatprep.subr.mxu0 %v1499_v50 }
  0x35   :  { %1198 = vmatpush3.msra.mxu0 %v1499_v50 }
  0x36   :  { %1112 = vmatmul.mubr.msk.f32.gmra.mxu0 %vm58_vm0, %v38_v33  ;;  %1199 = vmatprep.subr.mxu0 %v1503_v51 }
  0x37   :  { %1114 = vmatprep.mubr.msk.f32.mxu0 %vm58_vm0, %v39_v34  ;;  %1200 = vmatpush3.msra.mxu0 %v1503_v51 }
  0x38   :  { %1201 = vmatprep.subr.mxu0 %v1507_v52 }
  0x39   :  { %1202 = vmatpush3.msra.mxu0 %v1507_v52 }
  0x3a   :  { %1115 = vmatmul.mubr.msk.f32.gmra.mxu0 %vm58_vm0, %v40_v35  ;;  %1203 = vmatprep.subr.mxu0 %v1511_v53 }
  0x3b   :  { %1117 = vmatprep.mubr.msk.f32.mxu0 %vm58_vm0, %v41_v36  ;;  %1204 = vmatpush3.msra.mxu0 %v1511_v53 }
  0x3c   :  { %1205 = vmatprep.subr.mxu0 %v1515_v54 }
  0x3d   :  { %1206 = vmatpush3.msra.mxu0 %v1515_v54 }
  0x3e   :  { %1118 = vmatmul.mubr.msk.f32.gmra.mxu0 %vm58_vm0, %v42_v37  ;;  %1207 = vmatprep.subr.mxu0 %v1519_v55 }
  0x3f   :  { %1120 = vmatprep.mubr.msk.f32.mxu0 %vm58_vm0, %v43_v38  ;;  %1208 = vmatpush3.msra.mxu0 %v1519_v55 }
  0x40   :  { %1209 = vmatprep.subr.mxu0 %v1523_v56 }
  0x41   :  { %1210 = vmatpush3.msra.mxu0 %v1523_v56 }
  0x42   :  { %1121 = vmatmul.mubr.msk.f32.gmra.mxu0 %vm58_vm0, %v44_v39 }
  0xde   :  { %v1095_v58 = vpop.f32.mrf.mxu0 }
  0xdf   :  { %v191_v59 = vadd.f32 %v1095_v58, %v1529_v57 }
  0xe0   :  { %v185_v60 = vpop.f32.mrf.mxu0 }
  0xe1   :  { %v186_v61 = vadd.f32 %v1529_v57, %v185_v60  ;;  %v285_v0 = vmax.f32 %v191_v59, 0.0 }
  0xe2   :  { %v1098_v62 = vpop.f32.mrf.mxu0 }
  0xe3   :  { %v284_v63 = vmax.f32 %v186_v61, 0.0  ;;  %v201_v1 = vadd.f32 %v1098_v62, %v1529_v57 }
  0xe4   :  { %v195_v2 = vpop.f32.mrf.mxu0 }
  0xe5   :  { %v196_v3 = vadd.f32 %v1529_v57, %v195_v2  ;;  %1155 = vmatprep.mubr.f32.mxu1 %v284_v63  ;;  %v287_v7 = vmax.f32 %v201_v1, 0.0 }
  0xe6   :  { %v1101_v4 = vpop.f32.mrf.mxu0  ;;  %1156 = vmatmul.mubr.f32.vlgmr.msra.gmra.mxu1 %v285_v0 }
  0xe7   :  { %v286_v5 = vmax.f32 %v196_v3, 0.0  ;;  %v211_v6 = vadd.f32 %v1101_v4, %v1529_v57  ;;  %1263 = vmatpush3.msra.mxu1 %v525_v44 }
  0xe8   :  { %v205_v8 = vpop.f32.mrf.mxu0  ;;  %1248 = vmatprep.subr.mxu1 %v524_v45 }
  0xe9   :  { %v206_v9 = vadd.f32 %v1529_v57, %v205_v8  ;;  %1158 = vmatprep.mubr.f32.mxu1 %v286_v5  ;;  %1264 = vmatpush3.msra.mxu1 %v524_v45  ;;  %v289_v10 = vmax.f32 %v211_v6, 0.0 }
  0xea   :  { %v1104_v11 = vpop.f32.mrf.mxu0  ;;  %1159 = vmatmul.mubr.f32.gmra.mxu1 %v287_v7  ;;  %1249 = vmatprep.subr.mxu1 %v1485_v46 }
  0xeb   :  { %v288_v12 = vmax.f32 %v206_v9, 0.0  ;;  %v221_v13 = vadd.f32 %v1104_v11, %v1529_v57  ;;  %1265 = vmatpush3.msra.mxu1 %v1485_v46 }
  0xec   :  { %v215_v14 = vpop.f32.mrf.mxu0  ;;  %1250 = vmatprep.subr.mxu1 %v1487_v47 }
  0xed   :  { %v216_v15 = vadd.f32 %v1529_v57, %v215_v14  ;;  %1161 = vmatprep.mubr.f32.mxu1 %v288_v12  ;;  %1266 = vmatpush3.msra.mxu1 %v1487_v47  ;;  %v291_v16 = vmax.f32 %v221_v13, 0.0 }
  0xee   :  { %v1107_v17 = vpop.f32.mrf.mxu0  ;;  %1162 = vmatmul.mubr.f32.gmra.mxu1 %v289_v10  ;;  %1251 = vmatprep.subr.mxu1 %v1491_v48 }
  0xef   :  { %v290_v18 = vmax.f32 %v216_v15, 0.0  ;;  %v231_v19 = vadd.f32 %v1107_v17, %v1529_v57  ;;  %1267 = vmatpush3.msra.mxu1 %v1491_v48 }
  0xf0   :  { %v225_v20 = vpop.f32.mrf.mxu0  ;;  %1252 = vmatprep.subr.mxu1 %v1495_v49 }
  0xf1   :  { %v226_v21 = vadd.f32 %v1529_v57, %v225_v20  ;;  %1164 = vmatprep.mubr.f32.mxu1 %v290_v18  ;;  %1268 = vmatpush3.msra.mxu1 %v1495_v49  ;;  %v293_v22 = vmax.f32 %v231_v19, 0.0 }
  0xf2   :  { %v1110_v23 = vpop.f32.mrf.mxu0  ;;  %1165 = vmatmul.mubr.f32.gmra.mxu1 %v291_v16  ;;  %1253 = vmatprep.subr.mxu1 %v1499_v50 }
  0xf3   :  { %v292_v24 = vmax.f32 %v226_v21, 0.0  ;;  %v241_v25 = vadd.f32 %v1110_v23, %v1529_v57  ;;  %1269 = vmatpush3.msra.mxu1 %v1499_v50 }
  0xf4   :  { %v235_v26 = vpop.f32.mrf.mxu0  ;;  %1254 = vmatprep.subr.mxu1 %v1503_v51 }
  0xf5   :  { %v236_v27 = vadd.f32 %v1529_v57, %v235_v26  ;;  %1167 = vmatprep.mubr.f32.mxu1 %v292_v24  ;;  %1270 = vmatpush3.msra.mxu1 %v1503_v51  ;;  %v295_v28 = vmax.f32 %v241_v25, 0.0 }
  0xf6   :  { %v1113_v29 = vpop.f32.mrf.mxu0  ;;  %1168 = vmatmul.mubr.f32.gmra.mxu1 %v293_v22  ;;  %1255 = vmatprep.subr.mxu1 %v1507_v52 }
  0xf7   :  { %v294_v30 = vmax.f32 %v236_v27, 0.0  ;;  %v251_v31 = vadd.f32 %v1113_v29, %v1529_v57  ;;  %1271 = vmatpush3.msra.mxu1 %v1507_v52 }
  0xf8   :  { %v245_v32 = vpop.f32.mrf.mxu0  ;;  %1256 = vmatprep.subr.mxu1 %v1511_v53 }
  0xf9   :  { %v246_v33 = vadd.f32 %v1529_v57, %v245_v32  ;;  %1170 = vmatprep.mubr.f32.mxu1 %v294_v30  ;;  %1272 = vmatpush3.msra.mxu1 %v1511_v53  ;;  %v297_v34 = vmax.f32 %v251_v31, 0.0 }
  0xfa   :  { %v1116_v35 = vpop.f32.mrf.mxu0  ;;  %1171 = vmatmul.mubr.f32.gmra.mxu1 %v295_v28  ;;  %1257 = vmatprep.subr.mxu1 %v1515_v54 }
  0xfb   :  { %v296_v36 = vmax.f32 %v246_v33, 0.0  ;;  %v261_v37 = vadd.f32 %v1116_v35, %v1529_v57  ;;  %1273 = vmatpush3.msra.mxu1 %v1515_v54  ;;  %v512_v54 = vld [vmem:[#allocation2 + $0xe0] sm:$0xff] }
  0xfc   :  { %v255_v38 = vpop.f32.mrf.mxu0  ;;  %1258 = vmatprep.subr.mxu1 %v1519_v55  ;;  %1211 = vmatprep.subr.mxu0 %v512_v54 }
  0xfd   :  { %v256_v39 = vadd.f32 %v1529_v57, %v255_v38  ;;  %1173 = vmatprep.mubr.f32.mxu1 %v296_v36  ;;  %1274 = vmatpush3.msra.mxu1 %v1519_v55  ;;  %v299_v40 = vmax.f32 %v261_v37, 0.0  ;;  %v511_v55 = vld [vmem:[#allocation2 + $0xd8] sm:$0xff] }
  0xfe   :  { %v1119_v41 = vpop.f32.mrf.mxu0  ;;  %1174 = vmatmul.mubr.f32.gmra.mxu1 %v297_v34  ;;  %1259 = vmatprep.subr.mxu1 %v1523_v56 }
  0xff   :  { %v298_v42 = vmax.f32 %v256_v39, 0.0  ;;  %v271_v43 = vadd.f32 %v1119_v41, %v1529_v57  ;;  %1275 = vmatpush3.msra.mxu1 %v1523_v56  ;;  %1212 = vmatpush3.msra.mxu0 %v512_v54  ;;  %v510_v56 = vld [vmem:[#allocation2 + $0xd0] sm:$0xff] }
 0x100   :  { %v265_v44 = vpop.f32.mrf.mxu0  ;;  %1260 = vmatprep.subr.mxu1 %v512_v54  ;;  %1213 = vmatprep.subr.mxu0 %v511_v55 }
 0x101   :  { %v266_v45 = vadd.f32 %v1529_v57, %v265_v44  ;;  %1176 = vmatprep.mubr.f32.mxu1 %v298_v42  ;;  %v301_v46 = vmax.f32 %v271_v43, 0.0  ;;  %1276 = vmatpush3.msra.mxu1 %v512_v54  ;;  %v1595_v54 = vld [vmem:[#allocation2 + $0x150] ss:$0 sm:$0xff] }
 0x102   :  { %v1122_v47 = vpop.f32.mrf.mxu0  ;;  %1177 = vmatmul.mubr.f32.gmra.mxu1 %v299_v40  ;;  %1261 = vmatprep.subr.mxu1 %v511_v55 }
 0x103   :  { %v300_v48 = vmax.f32 %v266_v45, 0.0  ;;  %v281_v49 = vadd.f32 %v1122_v47, %v1529_v57  ;;  %1214 = vmatpush3.msra.mxu0 %v511_v55  ;;  %1277 = vmatpush3.msra.mxu1 %v511_v55 }
 0x104   :  { %v275_v50 = vpop.f32.mrf.mxu0  ;;  %1215 = vmatprep.subr.mxu0 %v510_v56  ;;  %1262 = vmatprep.subr.mxu1 %v510_v56 }
 0x105   :  { %v276_v51 = vadd.f32 %v1529_v57, %v275_v50  ;;  %1179 = vmatprep.mubr.f32.mxu1 %v300_v48  ;;  %v303_v52 = vmax.f32 %v281_v49, 0.0  ;;  %1216 = vmatpush3.msra.mxu0 %v510_v56  ;;  %v1573_v57 = vld [vmem:[#allocation2 + $0xc8] ss:$0 sm:$0xff] }
 0x106   :  { %1180 = vmatmul.mubr.f32.gmra.mxu1 %v301_v46 }
 0x107   :  { %v302_v53 = vmax.f32 %v276_v51, 0.0  ;;  %1278 = vmatpush3.msra.mxu1 %v510_v56 }
 0x109   :  { %1182 = vmatprep.mubr.f32.mxu1 %v302_v53 }
 0x10a   :  { %1183 = vmatmul.mubr.f32.gmra.mxu1 %v303_v52 }
 0x1a6   :  { %v1157_v58 = vpop.f32.mrf.mxu1 }
 0x1a7   :  { %v397_v59 = vadd.f32 %v1157_v58, %v1573_v57 }
 0x1a8   :  { %v391_v60 = vpop.f32.mrf.mxu1 }
 0x1a9   :  { %v392_v61 = vadd.f32 %v1573_v57, %v391_v60  ;;  %v491_v0 = vmax.f32 %v397_v59, 0.0  ;;  %v1598_v59 = vld [vmem:[#allocation2 + $0x158] ss:$0 sm:$0xff] }
 0x1aa   :  { %v1160_v62 = vpop.f32.mrf.mxu1 }
 0x1ab   :  { %v490_v63 = vmax.f32 %v392_v61, 0.0  ;;  %v407_v1 = vadd.f32 %v1160_v62, %v1573_v57 }
 0x1ac   :  { %v401_v2 = vpop.f32.mrf.mxu1 }
 0x1ad   :  { %v402_v3 = vadd.f32 %v1573_v57, %v401_v2  ;;  %1217 = vmatprep.mubr.f32.mxu0 %v490_v63  ;;  %v493_v6 = vmax.f32 %v407_v1, 0.0 }
 0x1ae   :  { %v1163_v4 = vpop.f32.mrf.mxu1  ;;  %1218 = vmatmul.mubr.f32.vlgmr.msra.gmra.mxu0 %v491_v0 }
 0x1af   :  { %v492_v5 = vmax.f32 %v402_v3, 0.0  ;;  %v417_v7 = vadd.f32 %v1163_v4, %v1573_v57 }
 0x1b0   :  { %v411_v8 = vpop.f32.mrf.mxu1 }
 0x1b1   :  { %v412_v9 = vadd.f32 %v1573_v57, %v411_v8  ;;  %1220 = vmatprep.mubr.f32.mxu0 %v492_v5  ;;  %v495_v12 = vmax.f32 %v417_v7, 0.0 }
 0x1b2   :  { %v1166_v10 = vpop.f32.mrf.mxu1  ;;  %1221 = vmatmul.mubr.f32.gmra.mxu0 %v493_v6 }
 0x1b3   :  { %v494_v11 = vmax.f32 %v412_v9, 0.0  ;;  %v427_v13 = vadd.f32 %v1166_v10, %v1573_v57 }
 0x1b4   :  { %v421_v14 = vpop.f32.mrf.mxu1 }
 0x1b5   :  { %v422_v15 = vadd.f32 %v1573_v57, %v421_v14  ;;  %1223 = vmatprep.mubr.f32.mxu0 %v494_v11  ;;  %v497_v18 = vmax.f32 %v427_v13, 0.0 }
 0x1b6   :  { %v1169_v16 = vpop.f32.mrf.mxu1  ;;  %1224 = vmatmul.mubr.f32.gmra.mxu0 %v495_v12 }
 0x1b7   :  { %v496_v17 = vmax.f32 %v422_v15, 0.0  ;;  %v437_v19 = vadd.f32 %v1169_v16, %v1573_v57 }
 0x1b8   :  { %v431_v20 = vpop.f32.mrf.mxu1 }
 0x1b9   :  { %v432_v21 = vadd.f32 %v1573_v57, %v431_v20  ;;  %1226 = vmatprep.mubr.f32.mxu0 %v496_v17  ;;  %v499_v24 = vmax.f32 %v437_v19, 0.0 }
 0x1ba   :  { %v1172_v22 = vpop.f32.mrf.mxu1  ;;  %1227 = vmatmul.mubr.f32.gmra.mxu0 %v497_v18 }
 0x1bb   :  { %v498_v23 = vmax.f32 %v432_v21, 0.0  ;;  %v447_v25 = vadd.f32 %v1172_v22, %v1573_v57 }
 0x1bc   :  { %v441_v26 = vpop.f32.mrf.mxu1 }
 0x1bd   :  { %v442_v27 = vadd.f32 %v1573_v57, %v441_v26  ;;  %1229 = vmatprep.mubr.f32.mxu0 %v498_v23  ;;  %v501_v30 = vmax.f32 %v447_v25, 0.0 }
 0x1be   :  { %v1175_v28 = vpop.f32.mrf.mxu1  ;;  %1230 = vmatmul.mubr.f32.gmra.mxu0 %v499_v24 }
 0x1bf   :  { %v500_v29 = vmax.f32 %v442_v27, 0.0  ;;  %v457_v31 = vadd.f32 %v1175_v28, %v1573_v57 }
 0x1c0   :  { %v451_v32 = vpop.f32.mrf.mxu1 }
 0x1c1   :  { %v452_v33 = vadd.f32 %v1573_v57, %v451_v32  ;;  %1232 = vmatprep.mubr.f32.mxu0 %v500_v29  ;;  %v503_v36 = vmax.f32 %v457_v31, 0.0 }
 0x1c2   :  { %v1178_v34 = vpop.f32.mrf.mxu1  ;;  %1233 = vmatmul.mubr.f32.gmra.mxu0 %v501_v30 }
 0x1c3   :  { %v502_v35 = vmax.f32 %v452_v33, 0.0  ;;  %v467_v37 = vadd.f32 %v1178_v34, %v1573_v57 }
 0x1c4   :  { %v461_v38 = vpop.f32.mrf.mxu1 }
 0x1c5   :  { %v462_v39 = vadd.f32 %v1573_v57, %v461_v38  ;;  %1235 = vmatprep.mubr.f32.mxu0 %v502_v35  ;;  %v505_v42 = vmax.f32 %v467_v37, 0.0 }
 0x1c6   :  { %v1181_v40 = vpop.f32.mrf.mxu1  ;;  %1236 = vmatmul.mubr.f32.gmra.mxu0 %v503_v36 }
 0x1c7   :  { %v504_v41 = vmax.f32 %v462_v39, 0.0  ;;  %v477_v43 = vadd.f32 %v1181_v40, %v1573_v57 }
 0x1c8   :  { %v471_v44 = vpop.f32.mrf.mxu1 }
 0x1c9   :  { %v472_v45 = vadd.f32 %v1573_v57, %v471_v44  ;;  %1238 = vmatprep.mubr.f32.mxu1 %v504_v41  ;;  %v507_v48 = vmax.f32 %v477_v43, 0.0 }
 0x1ca   :  { %v1184_v46 = vpop.f32.mrf.mxu1  ;;  %1239 = vmatmul.mubr.f32.vlgmr.msra.gmra.mxu1 %v505_v42 }
 0x1cb   :  { %v506_v47 = vmax.f32 %v472_v45, 0.0  ;;  %v487_v49 = vadd.f32 %v1184_v46, %v1573_v57 }
 0x1cc   :  { %v481_v50 = vpop.f32.mrf.mxu1 }
 0x1cd   :  { %v482_v51 = vadd.f32 %v1573_v57, %v481_v50  ;;  %1241 = vmatprep.mubr.f32.mxu1 %v506_v47  ;;  %v509_v53 = vmax.f32 %v487_v49, 0.0 }
 0x1ce   :  { %1242 = vmatmul.mubr.f32.gmra.mxu1 %v507_v48 }
 0x1cf   :  { %v508_v52 = vmax.f32 %v482_v51, 0.0 }
 0x1d1   :  { %1244 = vmatprep.mubr.f32.mxu1 %v508_v52 }
 0x1d2   :  { %1245 = vmatmul.mubr.f32.gmra.mxu1 %v509_v53 }
 0x26e   :  { %v1219_v55 = vpop.f32.mrf.mxu0 }
 0x26f   :  { %v603_v56 = vadd.f32 %v1219_v55, %v1595_v54 }
 0x270   :  { %v597_v58 = vpop.f32.mrf.mxu0 }
 0x271   :  { %v697_v60 = vmax.f32 %v603_v56, 0.0  ;;  %v598_v61 = vadd.f32 %v1595_v54, %v597_v58 }
 0x272   :  { %v1222_v62 = vpop.f32.mrf.mxu0 }
 0x273   :  { %v696_v63 = vmax.f32 %v598_v61, 0.0  ;;  %v613_v57 = vadd.f32 %v1222_v62, %v1595_v54  ;;  %v723_v0 = vmul.f32 %v1598_v59, %v697_v60 }
 0x274   :  { %v607_v1 = vpop.f32.mrf.mxu0 }
 0x275   :  { %v699_v2 = vmax.f32 %v613_v57, 0.0  ;;  %v608_v3 = vadd.f32 %v1595_v54, %v607_v1  ;;  %744 = vadd.xlane.f32.xlu0 %v723_v0  ;;  %v722_v8 = vmul.f32 %v1598_v59, %v696_v63 }
 0x276   :  { %v1225_v4 = vpop.f32.mrf.mxu0 }
 0x277   :  { %v698_v5 = vmax.f32 %v608_v3, 0.0  ;;  %v623_v6 = vadd.f32 %v1225_v4, %v1595_v54  ;;  %v725_v7 = vmul.f32 %v1598_v59, %v699_v2 }
 0x278   :  { %v617_v9 = vpop.f32.mrf.mxu0 }
 0x279   :  { %v618_v10 = vadd.f32 %v1595_v54, %v617_v9  ;;  %748 = vadd.xlane.f32.xlu1 %v725_v7  ;;  %742 = vadd.xlane.f32.xlu0 %v722_v8  ;;  %v701_v12 = vmax.f32 %v623_v6, 0.0  ;;  %v724_v15 = vmul.f32 %v1598_v59, %v698_v5 }
 0x27a   :  { %v1228_v11 = vpop.f32.mrf.mxu0 }
 0x27b   :  { %v700_v13 = vmax.f32 %v618_v10, 0.0  ;;  %v633_v14 = vadd.f32 %v1228_v11, %v1595_v54  ;;  %v727_v23 = vmul.f32 %v1598_v59, %v701_v12  ;;  %v1639_v10 = vld [vmem:[#allocation2 + $0x160] ss:$0 sm:$0xff] }
 0x27c   :  { %v627_v16 = vpop.f32.mrf.mxu0 }
 0x27d   :  { %v628_v17 = vadd.f32 %v1595_v54, %v627_v16  ;;  %746 = vadd.xlane.f32.xlu1 %v724_v15  ;;  %v726_v18 = vmul.f32 %v1598_v59, %v700_v13  ;;  %v703_v20 = vmax.f32 %v633_v14, 0.0 }
 0x27e   :  { %v1231_v19 = vpop.f32.mrf.mxu0 }
 0x27f   :  { %v702_v21 = vmax.f32 %v628_v17, 0.0  ;;  %v643_v22 = vadd.f32 %v1231_v19, %v1595_v54  ;;  %750 = vadd.xlane.f32.xlu0 %v726_v18  ;;  %v729_v31 = vmul.f32 %v1598_v59, %v703_v20 }
 0x280   :  { %v637_v24 = vpop.f32.mrf.mxu0 }
 0x281   :  { %v638_v25 = vadd.f32 %v1595_v54, %v637_v24  ;;  %752 = vadd.xlane.f32.xlu1 %v727_v23  ;;  %v728_v26 = vmul.f32 %v1598_v59, %v702_v21  ;;  %v705_v28 = vmax.f32 %v643_v22, 0.0 }
 0x282   :  { %v1234_v27 = vpop.f32.mrf.mxu0 }
 0x283   :  { %v704_v29 = vmax.f32 %v638_v25, 0.0  ;;  %v653_v30 = vadd.f32 %v1234_v27, %v1595_v54  ;;  %754 = vadd.xlane.f32.xlu0 %v728_v26  ;;  %v731_v39 = vmul.f32 %v1598_v59, %v705_v28 }
 0x284   :  { %v647_v32 = vpop.f32.mrf.mxu0 }
 0x285   :  { %v648_v33 = vadd.f32 %v1595_v54, %v647_v32  ;;  %756 = vadd.xlane.f32.xlu1 %v729_v31  ;;  %v730_v34 = vmul.f32 %v1598_v59, %v704_v29  ;;  %v707_v36 = vmax.f32 %v653_v30, 0.0 }
 0x286   :  { %v1237_v35 = vpop.f32.mrf.mxu0 }
 0x287   :  { %v706_v37 = vmax.f32 %v648_v33, 0.0  ;;  %v663_v38 = vadd.f32 %v1237_v35, %v1595_v54  ;;  %758 = vadd.xlane.f32.xlu0 %v730_v34  ;;  %v733_v47 = vmul.f32 %v1598_v59, %v707_v36 }
 0x288   :  { %v657_v40 = vpop.f32.mrf.mxu0 }
 0x289   :  { %v658_v41 = vadd.f32 %v1595_v54, %v657_v40  ;;  %760 = vadd.xlane.f32.xlu1 %v731_v39  ;;  %v732_v42 = vmul.f32 %v1598_v59, %v706_v37  ;;  %v709_v44 = vmax.f32 %v663_v38, 0.0 }
 0x28a   :  { %v1240_v43 = vpop.f32.mrf.mxu1 }
 0x28b   :  { %v708_v45 = vmax.f32 %v658_v41, 0.0  ;;  %v673_v46 = vadd.f32 %v1240_v43, %v1595_v54  ;;  %762 = vadd.xlane.f32.xlu0 %v732_v42  ;;  %v735_v56 = vmul.f32 %v1598_v59, %v709_v44 }
 0x28c   :  { %v667_v48 = vpop.f32.mrf.mxu1 }
 0x28d   :  { %v668_v49 = vadd.f32 %v1595_v54, %v667_v48  ;;  %764 = vadd.xlane.f32.xlu1 %v733_v47  ;;  %v734_v50 = vmul.f32 %v1598_v59, %v708_v45  ;;  %v711_v52 = vmax.f32 %v673_v46, 0.0 }
 0x28e   :  { %v1243_v51 = vpop.f32.mrf.mxu1 }
 0x28f   :  { %v710_v53 = vmax.f32 %v668_v49, 0.0  ;;  %v683_v55 = vadd.f32 %v1243_v51, %v1595_v54  ;;  %766 = vadd.xlane.f32.xlu0 %v734_v50  ;;  %v737_v1 = vmul.f32 %v1598_v59, %v711_v52 }
 0x290   :  { %v677_v58 = vpop.f32.mrf.mxu1 }
 0x291   :  { %v678_v60 = vadd.f32 %v1595_v54, %v677_v58  ;;  %768 = vadd.xlane.f32.xlu1 %v735_v56  ;;  %v736_v61 = vmul.f32 %v1598_v59, %v710_v53  ;;  %v713_v63 = vmax.f32 %v683_v55, 0.0 }
 0x292   :  { %v1246_v62 = vpop.f32.mrf.mxu1 }
 0x293   :  { %v712_v57 = vmax.f32 %v678_v60, 0.0  ;;  %v693_v0 = vadd.f32 %v1246_v62, %v1595_v54  ;;  %770 = vadd.xlane.f32.xlu0 %v736_v61  ;;  %v739_v7 = vmul.f32 %v1598_v59, %v713_v63 }
 0x294   :  { %v687_v2 = vpop.f32.mrf.mxu1 }
 0x295   :  { %v688_v3 = vadd.f32 %v1595_v54, %v687_v2  ;;  %772 = vadd.xlane.f32.xlu1 %v737_v1  ;;  %v738_v4 = vmul.f32 %v1598_v59, %v712_v57  ;;  %v715_v5 = vmax.f32 %v693_v0, 0.0 }
 0x297   :  { %v714_v6 = vmax.f32 %v688_v3, 0.0  ;;  %774 = vadd.xlane.f32.xlu0 %v738_v4  ;;  %v741_v9 = vmul.f32 %v1598_v59, %v715_v5 }
 0x299   :  { %776 = vadd.xlane.f32.xlu1 %v739_v7  ;;  %v740_v8 = vmul.f32 %v1598_v59, %v714_v6 }
 0x29b   :  { %778 = vadd.xlane.f32.xlu0 %v740_v8 }
 0x29d   :  { %780 = vadd.xlane.f32.xlu1 %v741_v9 }
 0x2fe   :  { %v745_v11 = vpop.xlane.xlu0 %744 }
 0x2ff   :  { %v787_v54 = vadd.f32 %v1639_v10, %v745_v11 }
 0x301   :  { %v807_v12 = vsub.f32 0.0, %v787_v54 }
 0x302   :  { %v749_v13 = vpop.xlane.xlu1 %748  ;;  %v743_v14 = vpop.xlane.xlu0 %742 }
 0x303   :  { %v828_v15 = vmul.f32 1.442695, %v807_v12  ;;  %v789_v16 = vadd.f32 %v1639_v10, %v749_v13  ;;  %v786_v17 = vadd.f32 %v1639_v10, %v743_v14 }
 0x305   :  { %1282 = vpow2.f32 %v828_v15  ;;  %v809_v18 = vsub.f32 0.0, %v789_v16  ;;  %v806_v19 = vsub.f32 0.0, %v786_v17 }
 0x306   :  { %v747_v20 = vpop.xlane.xlu1 %746 }
 0x307   :  { %v832_v21 = vmul.f32 1.442695, %v809_v18  ;;  %v826_v59 = vmul.f32 1.442695, %v806_v19  ;;  %v788_v22 = vadd.f32 %v1639_v10, %v747_v20 }
 0x308   :  { %v751_v23 = vpop.xlane.xlu0 %750 }
 0x309   :  { %1284 = vpow2.f32 %v832_v21  ;;  %v808_v24 = vsub.f32 0.0, %v788_v22  ;;  %v790_v25 = vadd.f32 %v1639_v10, %v751_v23 }
 0x30a   :  { %1286 = vpow2.f32 %v826_v59  ;;  %v753_v26 = vpop.xlane.xlu1 %752 }
 0x30b   :  { %v830_v27 = vmul.f32 1.442695, %v808_v24  ;;  %v810_v28 = vsub.f32 0.0, %v790_v25  ;;  %v791_v29 = vadd.f32 %v1639_v10, %v753_v26 }
 0x30c   :  { %v755_v30 = vpop.xlane.xlu0 %754 }
 0x30d   :  { %1288 = vpow2.f32 %v830_v27  ;;  %v834_v31 = vmul.f32 1.442695, %v810_v28  ;;  %v811_v32 = vsub.f32 0.0, %v791_v29  ;;  %v792_v33 = vadd.f32 %v1639_v10, %v755_v30 }
 0x30e   :  { %v757_v34 = vpop.xlane.xlu1 %756 }
 0x30f   :  { %1290 = vpow2.f32 %v834_v31  ;;  %v836_v35 = vmul.f32 1.442695, %v811_v32  ;;  %v812_v36 = vsub.f32 0.0, %v792_v33  ;;  %v793_v37 = vadd.f32 %v1639_v10, %v757_v34 }
 0x310   :  { %v759_v38 = vpop.xlane.xlu0 %758 }
 0x311   :  { %1292 = vpow2.f32 %v836_v35  ;;  %v838_v39 = vmul.f32 1.442695, %v812_v36  ;;  %v813_v40 = vsub.f32 0.0, %v793_v37  ;;  %v794_v41 = vadd.f32 %v1639_v10, %v759_v38 }
 0x312   :  { %v1283_v42 = vpop.eup %1282  ;;  %v761_v43 = vpop.xlane.xlu1 %760 }
 0x313   :  { %v867_v44 = vadd.f32 1.0, %v1283_v42  ;;  %1294 = vpow2.f32 %v838_v39  ;;  %v840_v45 = vmul.f32 1.442695, %v813_v40  ;;  %v814_v46 = vsub.f32 0.0, %v794_v41 }
 0x314   :  { %v795_v47 = vadd.f32 %v1639_v10, %v761_v43  ;;  %v763_v48 = vpop.xlane.xlu0 %762 }
 0x315   :  { %1296 = vrcp.f32 %v867_v44  ;;  %v842_v49 = vmul.f32 1.442695, %v814_v46  ;;  %v796_v50 = vadd.f32 %v1639_v10, %v763_v48 }
 0x316   :  { %v1285_v51 = vpop.eup %1284  ;;  %1298 = vpow2.f32 %v840_v45  ;;  %v815_v52 = vsub.f32 0.0, %v795_v47  ;;  %v765_v53 = vpop.xlane.xlu1 %764 }
 0x317   :  { %v1287_v55 = vpop.eup %1286  ;;  %v869_v56 = vadd.f32 1.0, %v1285_v51  ;;  %1300 = vpow2.f32 %v842_v49  ;;  %v816_v58 = vsub.f32 0.0, %v796_v50  ;;  %v797_v60 = vadd.f32 %v1639_v10, %v765_v53 }
 0x318   :  { %v866_v61 = vadd.f32 1.0, %v1287_v55  ;;  %v844_v62 = vmul.f32 1.442695, %v815_v52  ;;  %v767_v63 = vpop.xlane.xlu0 %766 }
 0x319   :  { %1302 = vrcp.f32 %v869_v56  ;;  %v846_v57 = vmul.f32 1.442695, %v816_v58  ;;  %v817_v0 = vsub.f32 0.0, %v797_v60  ;;  %v798_v1 = vadd.f32 %v1639_v10, %v767_v63 }
 0x31a   :  { %v1289_v2 = vpop.eup %1288  ;;  %1304 = vrcp.f32 %v866_v61  ;;  %v769_v3 = vpop.xlane.xlu1 %768 }
 0x31b   :  { %v868_v4 = vadd.f32 1.0, %v1289_v2  ;;  %1306 = vpow2.f32 %v844_v62  ;;  %v848_v5 = vmul.f32 1.442695, %v817_v0  ;;  %v818_v6 = vsub.f32 0.0, %v798_v1 }
 0x31c   :  { %v1291_v7 = vpop.eup %1290  ;;  %1308 = vpow2.f32 %v846_v57  ;;  %v799_v8 = vadd.f32 %v1639_v10, %v769_v3  ;;  %v771_v9 = vpop.xlane.xlu0 %770 }
 0x31d   :  { %1310 = vrcp.f32 %v868_v4  ;;  %v870_v11 = vadd.f32 1.0, %v1291_v7  ;;  %v850_v54 = vmul.f32 1.442695, %v818_v6  ;;  %v800_v12 = vadd.f32 %v1639_v10, %v771_v9 }
 0x31e   :  { %v1293_v13 = vpop.eup %1292  ;;  %1312 = vpow2.f32 %v848_v5  ;;  %v819_v14 = vsub.f32 0.0, %v799_v8  ;;  %v773_v15 = vpop.xlane.xlu1 %772 }
 0x31f   :  { %1314 = vrcp.f32 %v870_v11  ;;  %v871_v16 = vadd.f32 1.0, %v1293_v13  ;;  %v820_v17 = vsub.f32 0.0, %v800_v12  ;;  %v801_v18 = vadd.f32 %v1639_v10, %v773_v15 }
 0x320   :  { %v1295_v19 = vpop.eup %1294  ;;  %1316 = vpow2.f32 %v850_v54  ;;  %v852_v20 = vmul.f32 1.442695, %v819_v14  ;;  %v775_v21 = vpop.xlane.xlu0 %774 }
 0x321   :  { %1318 = vrcp.f32 %v871_v16  ;;  %v872_v59 = vadd.f32 1.0, %v1295_v19  ;;  %v854_v22 = vmul.f32 1.442695, %v820_v17  ;;  %v821_v23 = vsub.f32 0.0, %v801_v18 }
 0x322   :  { %v1297_v24 = vpop.eup %1296  ;;  %1320 = vpow2.f32 %v852_v20  ;;  %v802_v25 = vadd.f32 %v1639_v10, %v775_v21  ;;  %v777_v26 = vpop.xlane.xlu1 %776 }
 0x323   :  { %v1299_v27 = vpop.eup %1298  ;;  %928 = vst.msk [vmem:[%s1743_s2 + $0x8] sm:$0xff] %vm926_vm1, %v1297_v24  ;;  %1322 = vrcp.f32 %v872_v59  ;;  %v856_v28 = vmul.f32 1.442695, %v821_v23  ;;  %v803_v29 = vadd.f32 %v1639_v10, %v777_v26 }
 0x324   :  { %v1301_v30 = vpop.eup %1300  ;;  %v873_v31 = vadd.f32 1.0, %v1299_v27  ;;  %1324 = vpow2.f32 %v854_v22  ;;  %v822_v32 = vsub.f32 0.0, %v802_v25  ;;  %v779_v33 = vpop.xlane.xlu0 %778 }
 0x325   :  { %v874_v34 = vadd.f32 1.0, %v1301_v30  ;;  %1326 = vpow2.f32 %v856_v28  ;;  %v823_v35 = vsub.f32 0.0, %v803_v29  ;;  %v804_v36 = vadd.f32 %v1639_v10, %v779_v33 }
 0x326   :  { %v1303_v37 = vpop.eup %1302  ;;  %1328 = vrcp.f32 %v873_v31  ;;  %v858_v38 = vmul.f32 1.442695, %v822_v32  ;;  %v781_v39 = vpop.xlane.xlu1 %780 }
 0x327   :  { %v1305_v40 = vpop.eup %1304  ;;  %930 = vst.msk [vmem:[%s1743_s2 + $0x18] sm:$0xff] %vm926_vm1, %v1303_v37  ;;  %1330 = vrcp.f32 %v874_v34  ;;  %v860_v41 = vmul.f32 1.442695, %v823_v35  ;;  %v824_v42 = vsub.f32 0.0, %v804_v36  ;;  %v805_v43 = vadd.f32 %v1639_v10, %v781_v39 }
 0x328   :  { %v1307_v44 = vpop.eup %1306  ;;  %927 = vst.msk [vmem:[%s1743_s2] sm:$0xff] %vm926_vm1, %v1305_v40  ;;  %1332 = vpow2.f32 %v858_v38 }
 0x329   :  { %v1309_v45 = vpop.eup %1308  ;;  %v875_v46 = vadd.f32 1.0, %v1307_v44  ;;  %1334 = vpow2.f32 %v860_v41  ;;  %v862_v47 = vmul.f32 1.442695, %v824_v42  ;;  %v825_v48 = vsub.f32 0.0, %v805_v43 }
 0x32a   :  { %v1311_v49 = vpop.eup %1310  ;;  %v876_v50 = vadd.f32 1.0, %v1309_v45 }
 0x32b   :  { %v1313_v51 = vpop.eup %1312  ;;  %929 = vst.msk [vmem:[%s1743_s2 + $0x10] sm:$0xff] %vm926_vm1, %v1311_v49  ;;  %1336 = vrcp.f32 %v875_v46  ;;  %v864_v10 = vmul.f32 1.442695, %v825_v48 }
 0x32c   :  { %v1315_v52 = vpop.eup %1314  ;;  %1338 = vrcp.f32 %v876_v50  ;;  %v877_v53 = vadd.f32 1.0, %v1313_v51 }
 0x32d   :  { %v1317_v55 = vpop.eup %1316  ;;  %931 = vst.msk [vmem:[%s1743_s2 + $0x20] sm:$0xff] %vm926_vm1, %v1315_v52  ;;  %1340 = vpow2.f32 %v862_v47 }
 0x32e   :  { %v1319_v56 = vpop.eup %1318  ;;  %1342 = vrcp.f32 %v877_v53  ;;  %v878_v58 = vadd.f32 1.0, %v1317_v55 }
 0x32f   :  { %v1321_v60 = vpop.eup %1320  ;;  %932 = vst.msk [vmem:[%s1743_s2 + $0x28] sm:$0xff] %vm926_vm1, %v1319_v56  ;;  %1344 = vpow2.f32 %v864_v10 }
 0x330   :  { %v1323_v61 = vpop.eup %1322  ;;  %1346 = vrcp.f32 %v878_v58  ;;  %v879_v62 = vadd.f32 1.0, %v1321_v60 }
 0x331   :  { %v1325_v63 = vpop.eup %1324  ;;  %933 = vst.msk [vmem:[%s1743_s2 + $0x30] sm:$0xff] %vm926_vm1, %v1323_v61 }
 0x332   :  { %v1327_v57 = vpop.eup %1326  ;;  %1348 = vrcp.f32 %v879_v62  ;;  %v880_v0 = vadd.f32 1.0, %v1325_v63 }
 0x333   :  { %v1329_v1 = vpop.eup %1328  ;;  %v881_v2 = vadd.f32 1.0, %v1327_v57 }
 0x334   :  { %v1331_v3 = vpop.eup %1330  ;;  %934 = vst.msk [vmem:[%s1743_s2 + $0x38] sm:$0xff] %vm926_vm1, %v1329_v1  ;;  %1350 = vrcp.f32 %v880_v0 }
 0x335   :  { %v1333_v4 = vpop.eup %1332  ;;  %935 = vst.msk [vmem:[%s1743_s2 + $0x40] sm:$0xff] %vm926_vm1, %v1331_v3  ;;  %1352 = vrcp.f32 %v881_v2 }
 0x336   :  { %v1335_v5 = vpop.eup %1334  ;;  %v882_v6 = vadd.f32 1.0, %v1333_v4 }
 0x337   :  { %v883_v7 = vadd.f32 1.0, %v1335_v5 }
 0x338   :  { %v1337_v8 = vpop.eup %1336  ;;  %1354 = vrcp.f32 %v882_v6 }
 0x339   :  { %v1339_v9 = vpop.eup %1338  ;;  %936 = vst.msk [vmem:[%s1743_s2 + $0x48] sm:$0xff] %vm926_vm1, %v1337_v8  ;;  %1356 = vrcp.f32 %v883_v7 }
 0x33a   :  { %v1341_v11 = vpop.eup %1340  ;;  %937 = vst.msk [vmem:[%s1743_s2 + $0x50] sm:$0xff] %vm926_vm1, %v1339_v9 }
 0x33b   :  { %v1343_v54 = vpop.eup %1342  ;;  %v884_v12 = vadd.f32 1.0, %v1341_v11 }
 0x33c   :  { %v1345_v13 = vpop.eup %1344  ;;  %938 = vst.msk [vmem:[%s1743_s2 + $0x58] sm:$0xff] %vm926_vm1, %v1343_v54 }
 0x33d   :  { %v1347_v14 = vpop.eup %1346  ;;  %1358 = vrcp.f32 %v884_v12  ;;  %v885_v15 = vadd.f32 1.0, %v1345_v13 }
 0x33e   :  { %939 = vst.msk [vmem:[%s1743_s2 + $0x60] sm:$0xff] %vm926_vm1, %v1347_v14 }
 0x33f   :  { %v1349_v16 = vpop.eup %1348  ;;  %1360 = vrcp.f32 %v885_v15 }
 0x340   :  { %940 = vst.msk [vmem:[%s1743_s2 + $0x68] sm:$0xff] %vm926_vm1, %v1349_v16 }
 0x341   :  { %v1351_v17 = vpop.eup %1350 }
 0x342   :  { %v1353_v18 = vpop.eup %1352  ;;  %941 = vst.msk [vmem:[%s1743_s2 + $0x70] sm:$0xff] %vm926_vm1, %v1351_v17 }
 0x343   :  { %942 = vst.msk [vmem:[%s1743_s2 + $0x78] sm:$0xff] %vm926_vm1, %v1353_v18 }
 0x345   :  { %v1355_v19 = vpop.eup %1354 }
 0x346   :  { %v1357_v20 = vpop.eup %1356  ;;  %943 = vst.msk [vmem:[%s1743_s2 + $0x80] sm:$0xff] %vm926_vm1, %v1355_v19 }
 0x347   :  { %944 = vst.msk [vmem:[%s1743_s2 + $0x88] sm:$0xff] %vm926_vm1, %v1357_v20 }
 0x34a   :  { %v1359_v21 = vpop.eup %1358 }
 0x34b   :  { %945 = vst.msk [vmem:[%s1743_s2 + $0x90] sm:$0xff] %vm926_vm1, %v1359_v21 }
 0x34c   :  { %v1361_v59 = vpop.eup %1360 }
 0x34d   :  { %946 = vst.msk [vmem:[%s1743_s2 + $0x98] sm:$0xff] %vm926_vm1, %v1361_v59 }
 0x34e   :  { %951 = vsyncpa [#allocation3], 1 }

</bundles_post_ra>
